<compile_context>
chip_gen: v6e
topology: v6e:2x2x1
jax: 0.10.0
libtpu: 0.0.40
codegen_flags: <defaults>
</compile_context>

<pallas_src>
import functools

import jax
import jax.numpy as jnp
from jax.experimental import pallas as pl
from jax.experimental.pallas import tpu as pltpu


# ----------------------------- Pallas kernels --------------------------------
def _project_kernel(w_ref, xt_ref, out_ref):
    """zT tile = W @ xT tile:  (C, tn) = (C, F) @ (F, tn)."""
    out_ref[...] = jnp.dot(
        w_ref[...], xt_ref[...], preferred_element_type=jnp.float32
    ).astype(out_ref.dtype)


def _propagate_kernel(h_ref, adjt_ref, b_ref, out_ref, *, finalize):
    """One propagation hop in transposed / lane-dense layout.

    h_ref:    (C, Np)  f32  -- fully VMEM-resident state (columns = src nodes)
    adjt_ref: (tk, tn) bf16 -- contiguous pre-tiled A_hat^T block (rows=src, cols=dst)
    b_ref:    (C, 1)   f32  -- linear bias (used only on the final hop)
    out_ref:  (C, tn)  f32  -- output tile; revisited across the k axis => accumulator
    """
    k = pl.program_id(1)
    tk = adjt_ref.shape[0]

    @pl.when(k == 0)
    def _():
        out_ref[...] = jnp.zeros_like(out_ref)

    start = pl.multiple_of(k * tk, tk)          # aligned, lane-tile-friendly slice of hT
    h_blk = h_ref[:, pl.ds(start, tk)]
    out_ref[...] += jnp.dot(h_blk, adjt_ref[...], preferred_element_type=jnp.float32)

    if finalize:
        @pl.when(k == pl.num_programs(1) - 1)
        def _():
            # Fused bias + log_softmax over classes (sublane axis) on the f32 accumulator.
            logits = out_ref[...] + b_ref[...]
            m = jnp.max(logits, axis=0, keepdims=True)
            shifted = logits - m
            lse = jnp.log(jnp.sum(jnp.exp(shifted), axis=0, keepdims=True))
            out_ref[...] = shifted - lse


# ------------------------------- helpers --------------------------------------
def _round_up(x, m):
    return (x + m - 1) // m * m


def _pick_tile(n, preferred):
    """Largest multiple of 128 <= preferred that divides n (n must be a 128-multiple)."""
    assert n % 128 == 0
    t = max(128, (min(preferred, n) // 128) * 128)
    while n % t != 0:
        t -= 128
    return t


def _vmem_limit_bytes():
    """Generation-gated VMEM limit: ~3/4 of physical, capped at 96 MiB (v7x -> 48 MiB)."""
    try:
        cap = int(pltpu.get_tpu_info().vmem_capacity_bytes)
        return int(min(cap - cap // 4, 96 * 1024 * 1024))
    except Exception:
        return 32 * 1024 * 1024  # safe on every generation (>= v5e scoped default x2)


def _adj_block_spec(block_k, block_n):
    """Streamed, pre-tiled adjacency block; 3-deep buffering if this jax supports it."""
    idx = lambda i, k: (k, i, 0, 0)
    try:
        return pl.BlockSpec((None, None, block_k, block_n), idx,
                            pipeline_mode=pl.Buffered(3))
    except (AttributeError, TypeError):
        return pl.BlockSpec((None, None, block_k, block_n), idx)


# ------------------------------- wrappers --------------------------------------
def _project(weight, x_t, *, block_n, vmem_limit):
    c, f = weight.shape
    n = x_t.shape[1]
    return pl.pallas_call(
        _project_kernel,
        out_shape=jax.ShapeDtypeStruct((c, n), jnp.float32),
        grid_spec=pltpu.PrefetchScalarGridSpec(
            num_scalar_prefetch=0,
            grid=(n // block_n,),
            in_specs=[
                pl.BlockSpec((c, f), lambda i: (0, 0)),          # W resident
                pl.BlockSpec((f, block_n), lambda i: (0, i)),    # xT streamed
            ],
            out_specs=pl.BlockSpec((c, block_n), lambda i: (0, i)),
        ),
        compiler_params=pltpu.CompilerParams(
            dimension_semantics=("parallel",),
            vmem_limit_bytes=vmem_limit,
        ),
        cost_estimate=pl.CostEstimate(
            flops=2 * n * f * c,
            transcendentals=0,
            bytes_accessed=weight.size * 4 + x_t.size * 4 + c * n * 4,
        ),
    )(weight, x_t)


def _propagate_pass(h_t, adj_tiles, bias_col, *, block_n, block_k, finalize, vmem_limit):
    c, n = h_t.shape
    kernel = functools.partial(_propagate_kernel, finalize=finalize)
    return pl.pallas_call(
        kernel,
        out_shape=jax.ShapeDtypeStruct((c, n), jnp.float32),
        grid_spec=pltpu.PrefetchScalarGridSpec(
            num_scalar_prefetch=0,
            grid=(n // block_n, n // block_k),
            in_specs=[
                pl.BlockSpec((c, n), lambda i, k: (0, 0)),       # hT fully resident
                _adj_block_spec(block_k, block_n),               # A_hat^T tile stream
                pl.BlockSpec((c, 1), lambda i, k: (0, 0)),       # bias
            ],
            out_specs=pl.BlockSpec((c, block_n), lambda i, k: (0, i)),  # f32 accumulator
        ),
        compiler_params=pltpu.CompilerParams(
            dimension_semantics=("parallel", "arbitrary"),
            vmem_limit_bytes=vmem_limit,
        ),
        cost_estimate=pl.CostEstimate(
            flops=2 * n * n * c,
            transcendentals=(c * n if finalize else 0),
            bytes_accessed=adj_tiles.size * 2 + 3 * c * n * 4,
        ),
    )(h_t, adj_tiles, bias_col)


def sgc_forward(adj_hat, x, weight, bias, *, k=1, block_n=2048, block_k=1024):
    """Full SGC forward.

    adj_hat: (N, N) f32   normalized adjacency A_hat[dst, src]
    x:       (N, F) f32   node features
    weight:  (C, F) f32   Linear weight (torch layout, out x in)
    bias:    (C,)   f32   Linear bias
    returns: (N, C) f32   log-probabilities
    """
    if k < 1:
        raise ValueError("SGConv requires K >= 1")
    n, f = x.shape
    c = weight.shape[0]

    # --- one-time cached prep (SGConv cached=True) ----------------------------
    # Zero-pad the node dim so tiles are always (multiple-of-128) divisors of Np:
    # padded rows/cols are all-zero -> no effect on real nodes, sliced off at the end.
    pad_unit = 128 if n <= 512 else 512
    n_pad = _round_up(n, pad_unit)
    block_n = _pick_tile(n_pad, block_n)
    block_k = _pick_tile(n_pad, block_k)
    pad = n_pad - n
    if pad:
        adj_hat = jnp.pad(adj_hat, ((0, pad), (0, pad)))
        x = jnp.pad(x, ((0, pad), (0, 0)))

    # Lane-dense transposed layouts; adjacency cast to bf16 (halves the HBM stream) and
    # pre-tiled into contiguous (Np/bk, Np/bn, bk, bn) blocks -> one burst DMA per tile.
    adj_t = adj_hat.T.astype(jnp.bfloat16)
    adj_tiles = (
        adj_t.reshape(n_pad // block_k, block_k, n_pad // block_n, block_n)
        .transpose(0, 2, 1, 3)
    )
    x_t = x.T.astype(jnp.float32)
    bias_col = bias.reshape(c, 1).astype(jnp.float32)
    vmem_limit = _vmem_limit_bytes()

    # Projection tile: keep the streamed (F, tile) f32 slab modest for any F.
    proj_pref = max(128, ((2 * 1024 * 1024) // (4 * max(f, 1))) // 128 * 128)
    block_n_proj = _pick_tile(n_pad, min(block_n, proj_pref))

    # TODO(synk): fuse the projection into the first propagation pass to save one launch.
    h_t = _project(weight.astype(jnp.float32), x_t,
                   block_n=block_n_proj, vmem_limit=vmem_limit)     # (C, Np) f32
    for step in range(k):
        h_t = _propagate_pass(
            h_t, adj_tiles, bias_col,
            block_n=block_n, block_k=block_k,
            finalize=(step == k - 1),
            vmem_limit=vmem_limit,
        )
    return h_t[:, :n].T  # (N, C) log-probs, padded nodes dropped


# ------------------------------- JAX glue ------------------------------------
def gcn_norm_dense(edge_index, edge_weight, num_nodes):
    """Dense D^{-1/2} (A + I) D^{-1/2}; A[dst, src] = w (source_to_target flow)."""
    src = edge_index[0]
    dst = edge_index[1]
    a = jnp.zeros((num_nodes, num_nodes), jnp.float32)
    a = a.at[dst, src].add(edge_weight.astype(jnp.float32))
    a = a + jnp.eye(num_nodes, dtype=jnp.float32)    # self-loops (fill_value = 1)
    deg = jnp.sum(a, axis=1)                          # in-degree incl. self-loop
    d_inv_sqrt = jnp.where(deg > 0.0, 1.0 / jnp.sqrt(deg), 0.0)
    return d_inv_sqrt[:, None] * a * d_inv_sqrt[None, :]


def sgc_reference(adj_hat, x, weight, bias, k):
    """Pure-f32 reference in the ORIGINAL operation order (propagate, then linear)."""
    h = x
    for _ in range(k):
        h = adj_hat @ h
    logits = h @ weight.T + bias
    return jax.nn.log_softmax(logits, axis=1)


# --------------------------------- main --------------------------------------
if __name__ == "__main__":
    key = jax.random.PRNGKey(0)
    k_src, k_dst, k_ew, k_x, k_w, k_b = jax.random.split(key, 6)

    # Small synthetic "dataset": N nodes (non-128-divisible to exercise padding),
    # F features, C classes, K hops.
    N = 250
    F = 32            # dataset.num_features
    C = 8             # dataset.num_classes
    K = 2             # SGC(k=...) -> SGConv(K=K)
    E = 1024          # directed edges before symmetrization

    # Random undirected graph with positive edge weights (data.edge_index / edge_attr).
    src = jax.random.randint(k_src, (E,), 0, N)
    dst = jax.random.randint(k_dst, (E,), 0, N)
    w = jax.random.uniform(k_ew, (E,), minval=0.5, maxval=1.5)
    edge_index = jnp.stack(
        [jnp.concatenate([src, dst]), jnp.concatenate([dst, src])], axis=0
    ).astype(jnp.int32)
    edge_attr = jnp.concatenate([w, w]).astype(jnp.float32)

    # Node features (data.x).
    x = jax.random.normal(k_x, (N, F), dtype=jnp.float32)

    # SGConv.lin parameters (torch.nn.Linear-style uniform init), torch layout (C, F).
    bound = 1.0 / (F ** 0.5)
    weight = jax.random.uniform(k_w, (C, F), minval=-bound, maxval=bound)
    bias = jax.random.uniform(k_b, (C,), minval=-bound, maxval=bound)

    # Normalized dense adjacency (setup glue, cached — not the hot path).
    adj_hat = gcn_norm_dense(edge_index, edge_attr, N)
    ref = sgc_reference(adj_hat, x, weight, bias, K)

    # Run once with the performance-default tiles (single padded tile here) and once
    # with small explicit tiles to exercise the multi-tile streamed grid + padding path.
    out = jax.block_until_ready(sgc_forward(adj_hat, x, weight, bias, k=K))
    out_small = jax.block_until_ready(
        sgc_forward(adj_hat, x, weight, bias, k=K, block_n=128, block_k=128)
    )

    for o in (out, out_small):
        assert o.shape == (N, C)
        assert bool(jnp.all(jnp.isfinite(o))), "non-finite output"
        max_diff = float(jnp.max(jnp.abs(o - ref)))
        assert jnp.allclose(o, ref, atol=5e-2, rtol=5e-2), (
            f"mismatch vs reference (max diff {max_diff})"
        )

    print("KERNEL_OK")
</pallas_src>

<mosaic_0001>
module attributes {stable_mosaic.version = 11 : i64} {
  func.func @_project_kernel(%arg0: i32, %arg1: memref<8x32xf32, #tpu.memory_space<vmem>>, %arg2: memref<32x256xf32, #tpu.memory_space<vmem>>, %arg3: memref<8x256xf32, #tpu.memory_space<vmem>>) attributes {dimension_semantics = [#tpu.dimension_semantics<parallel>], iteration_bounds = array<i64: 1>, scalar_prefetch = 0 : i64, scratch_operands = 0 : i64, tpu.core_type = #tpu.core_type<tc>, window_params = [{pipeline_mode = #tpu.pipeline_mode<synchronous>, transform_indices = @transform_0, window_bounds = array<i64: 8, 32>}, {transform_indices = @transform_1, window_bounds = array<i64: 32, 256>}, {transform_indices = @transform_2, window_bounds = array<i64: 8, 256>}]} {
    %c0 = arith.constant 0 : index
    %c0_0 = arith.constant 0 : index
    %0 = vector.load %arg1[%c0, %c0_0] : memref<8x32xf32, #tpu.memory_space<vmem>>, vector<8x32xf32>
    %c0_1 = arith.constant 0 : index
    %c0_2 = arith.constant 0 : index
    %1 = vector.load %arg2[%c0_1, %c0_2] : memref<32x256xf32, #tpu.memory_space<vmem>>, vector<32x256xf32>
    %cst = arith.constant dense<0.000000e+00> : vector<8x256xf32>
    %2 = tpu.matmul %0, %1, %cst {dimension_numbers = #tpu.dot_dimension_numbers<[1], [0], [0], [1], [0, 0, 1, 1], [], []>} : vector<8x32xf32>, vector<32x256xf32>, vector<8x256xf32> -> vector<8x256xf32>
    %c0_3 = arith.constant 0 : index
    %c0_4 = arith.constant 0 : index
    %3 = vector.load %arg3[%c0_3, %c0_4] : memref<8x256xf32, #tpu.memory_space<vmem>>, vector<8x256xf32>
    tpu.vector_store %arg3[%c0_3, %c0_4], %2 {strides = array<i32>} : memref<8x256xf32, #tpu.memory_space<vmem>>, vector<8x256xf32>,
    return
  }
  func.func @transform_0(%arg0: i32) -> (i32, i32) {
    %c0_i32 = arith.constant 0 : i32
    %c0_i32_0 = arith.constant 0 : i32
    %c0_i32_1 = arith.constant 0 : i32
    return %c0_i32, %c0_i32_0 : i32, i32
  }
  func.func @transform_1(%arg0: i32) -> (i32, i32) {
    %c0_i32 = arith.constant 0 : i32
    %c0_i32_0 = arith.constant 0 : i32
    return %c0_i32, %arg0 : i32, i32
  }
  func.func @transform_2(%arg0: i32) -> (i32, i32) {
    %c0_i32 = arith.constant 0 : i32
    %c0_i32_0 = arith.constant 0 : i32
    return %c0_i32, %arg0 : i32, i32
  }
}

</mosaic_0001>

<bundles_post_ra>
// kernel: tpu_custom_call.1
= control target key start
LH: loop header
LB: loop body
LE: loop exit
PB: predicated region body
PF: predicated region fallthrough
CT: control target
= control target key end

     0   :  { %7 = vsyncpa [#allocation3], 0  ;;  %s243_s0 = inlined_call_operand.hbm [shape: f32[8,32], index: 0, kind: input, shape index: {}]   ;;  %s244_s1 = inlined_call_operand.hbm [shape: f32[32,256], index: 1, kind: input, shape index: {}]   ;;  %s245_s2 = inlined_call_operand.hbm [shape: f32[8,256], index: 2, kind: output, shape index: {}]  }
   0x1   :  { %8 = vsyncpa [#allocation6], 0 }
   0x2   :  { %9 = vsyncpa [#allocation4], 0  ;;  %s213_s9 = smov [#allocation2]   ;;  %s214_s11 = smov [#allocation5]  }
   0x3   :  { %s16_s10 = sshll.u32 %s213_s9, 4  ;;  %s25_s12 = sshll.u32 %s214_s11, 4  ;;  %s17_s10 = int_to_ptr.vmem [resolvable:$true] %s16_s10  ;;  %s26_s12 = int_to_ptr.vmem [resolvable:$true] %s25_s12 }
   0x4   :  { %s155_s13 = scalar_lea.vmem %s17_s10, 128  ;;  %p160_p1 = scmp.lt.s32.totalorder %s17_s10, %s17_s10 }
   0x5   :  { %p156_p0 = scmp.ne.s32.totalorder %s17_s10, %s155_s13  ;;  %p161_p2 = scmp.lt.s32.totalorder %s155_s13, %s155_s13 }
   0x7   :  { %p162_p3 = por %p161_p2, %p160_p1 }
   0x9   :  { %p163_p4 = pnand %p162_p3, %p156_p0 }
   0xb   :  { %166 = shalt.err (!%p163_p4)
}
   0xc   :  { %19 = dma.hbm_to_vmem [thread:$0]  %s243_s0, 128, %s17_s10, [#allocation3]  }
   0xd   :  { %s175_s16 = scalar_lea.vmem %s26_s12, 1024  ;;  %p180_p6 = scmp.lt.s32.totalorder %s26_s12, %s26_s12 }
   0xe   :  { %p176_p5 = scmp.ne.s32.totalorder %s26_s12, %s175_s16  ;;  %p181_p7 = scmp.lt.s32.totalorder %s175_s16, %s175_s16 }
  0x10   :  { %p182_p8 = por %p181_p7, %p180_p6 }
  0x12   :  { %p183_p9 = pnand %p182_p8, %p176_p5 }
  0x14   :  { %186 = shalt.err (!%p183_p9)
}
  0x15   :  { %s215_s17 = smov 256   ;;  %s216_s18 = smov 16  }
  0x16   :  { %31 = dma.hbm_to_vmem [thread:$0]  %s244_s1, 1024, %s26_s12, [#allocation6], %s215_s17, %s215_s17, %s216_s18  }
  0x17   :  { %207 = dma.done.wait [#allocation3], 128  }
  0x18   :  { %208 = vsyncadd [#allocation3], 4294967168 }
  0x19   :  { %209 = dma.done.wait [#allocation6], 1024  }
  0x1a   :  { %210 = vsyncadd [#allocation6], 4294966272  ;;  %v217_v0 = vmov 0.0   ;;  %v46_v1 = vld [vmem:[#allocation5 + $0x38] sm:$0xff]  ;;  %v45_v2 = vld [vmem:[#allocation5 + $0x30] sm:$0xff]  ;;  %vm47_vm0 = vcmask 261120  }
  0x1b   :  { %115 = vmatprep.mubr.f32.mxu0 %v217_v0  ;;  %v44_v3 = vld [vmem:[#allocation5 + $0x28] sm:$0xff]  ;;  %75 = vmatprep.subr.mxu0 %v46_v1  ;;  %v43_v4 = vld [vmem:[#allocation5 + $0x20] sm:$0xff]  ;;  %v42_v5 = vld [vmem:[#allocation5 + $0x18] sm:$0xff]  ;;  %s218_s0 = smov [#allocation7]  }
  0x1c   :  { %76 = vmatpush1.msra.mxu0 %v45_v2  ;;  %v41_v6 = vld [vmem:[#allocation5 + $0x10] sm:$0xff]  ;;  %v40_v7 = vld [vmem:[#allocation5 + $0x8] sm:$0xff]  ;;  %v39_v8 = vld [vmem:[#allocation5] sm:$0xff]  ;;  %s130_s1 = sshll.u32 %s218_s0, 4  ;;  %s131_s1 = int_to_ptr.vmem [resolvable:$true] %s130_s1 }
  0x1d   :  { %77 = vmatprep.subr.mxu0 %v44_v3  ;;  %v38_v9 = vld [vmem:[#allocation2] sm:$0xff]  ;;  %s187_s21 = scalar_lea.vmem %s131_s1, 256  ;;  %p192_p11 = scmp.lt.s32.totalorder %s131_s1, %s131_s1 }
  0x1e   :  { %78 = vmatpush1.msra.mxu0 %v43_v4  ;;  %p188_p10 = scmp.ne.s32.totalorder %s131_s1, %s187_s21  ;;  %p193_p12 = scmp.lt.s32.totalorder %s187_s21, %s187_s21 }
  0x1f   :  { %79 = vmatprep.subr.mxu0 %v42_v5 }
  0x20   :  { %80 = vmatpush1.msra.mxu0 %v41_v6  ;;  %p194_p13 = por %p193_p12, %p192_p11 }
  0x21   :  { %81 = vmatprep.subr.mxu0 %v40_v7 }
  0x22   :  { %82 = vmatpush1.msra.mxu0 %v39_v8  ;;  %p195_p0 = pnand %p194_p13, %p188_p10 }
  0x23   :  { %140 = vmatmul.mubr.msk.f32.vlgmr.msra.gmra.mxu0 %vm47_vm0, %v38_v9 }
  0xe3   :  { %v117_v10 = vpop.f32.mrf.mxu0 }
  0xe4   :  { %122 = vst [vmem:[#allocation7] sm:$0xff] %v117_v10 }
  0xe5   :  { %v119_v11 = vpop.f32.mrf.mxu0 }
  0xe6   :  { %123 = vst [vmem:[#allocation7 + $0x8] sm:$0xff] %v119_v11 }
  0xe7   :  { %198 = shalt.err (!%p195_p0)
}
  0xe8   :  { %133 = dma.vmem_to_hbm [thread:$0]  %s131_s1, 256, %s245_s2, [#allocation4]  }
  0xe9   :  { %211 = dma.done.wait [#allocation4], 256  }
  0xea   :  { %212 = vsyncadd [#allocation4], 4294967040 }
  0xeb   :  { %137 = vsyncpa [#allocation3], 1 }
  0xec   :  { %138 = vsyncpa [#allocation6], 1 }
  0xed   :  { %139 = vsyncpa [#allocation4], 1 }

</bundles_post_ra>
